<compile_context>
chip_gen: v5e
topology: v5e:2x2
jax: 0.10.0
libtpu: 0.0.40
codegen_flags: <defaults>
</compile_context>

<pallas_src>
import jax
import jax.numpy as jnp
from jax.experimental import pallas as pl
from jax.experimental.pallas import tpu as pltpu

TM4_MAX = 8192  # row-groups (of 4 original rows) per grid step -> 4 MiB of x


def mlp_kernel(x_ref, w1t_ref, b1_ref, w2t_ref, b2_ref, o_ref):
    # x_ref:   (TM4, 4*D)  four original rows packed per lane-dense row
    # w1t_ref: (4*D, 4*H)  block-diagonal kron(I4, w1.T)
    # b1_ref:  (1, 4*H)    fc1 bias tiled 4x
    # w2t_ref: (4*H, 4)    block-diagonal kron(I4, w2.T)
    # b2_ref:  (1,)        fc2 bias scalar (SMEM)
    # o_ref:   (TM4, 4)    o[r, g] = net(x[4*r + g])
    h = jnp.dot(x_ref[...], w1t_ref[...], preferred_element_type=jnp.float32)
    h = jnp.maximum(h + b1_ref[...], 0.0)
    out = jnp.dot(h, w2t_ref[...], preferred_element_type=jnp.float32)
    o_ref[...] = (out + b2_ref[0]).astype(o_ref.dtype)


def _pick_tile(n4):
    """Row-groups per grid step: big enough to hide per-step overhead,
    >=2 steps when possible (megacore), multiple of 8 for (8,128) tiling."""
    if n4 <= 16:
        return n4  # single full-array block (bypasses the (8,128) constraint)
    half = pl.cdiv(n4, 2)
    return min(TM4_MAX, ((half + 7) // 8) * 8)


def net_forward(x, w1, b1, w2, b2):
    """x: (N, D); w1: (H, D); b1: (H,); w2: (1, H); b2: (1,). Returns (N, 1)."""
    N, D = x.shape
    H = w1.shape[0]  # hidden width (3)

    # Rare fallback: pad the batch to a multiple of 4 (at most 3 rows).
    n_pad4 = pl.cdiv(N, 4) * 4
    if n_pad4 != N:
        x = jnp.pad(x, ((0, n_pad4 - N), (0, 0)))
    n4 = n_pad4 // 4

    # Free, row-major-compatible view: 4 original rows per (lane-dense) row.
    x_r = x.reshape(n4, 4 * D)

    # Block-diagonal weights (tiny, built once in the wrapper).
    f32 = jnp.float32
    eye4 = jnp.eye(4, dtype=f32)
    w1t = jnp.kron(eye4, w1.T.astype(f32))               # (4*D, 4*H)
    w2t = jnp.kron(eye4, w2.T.astype(f32))               # (4*H, 4)
    b1t = jnp.tile(b1.astype(f32), 4).reshape(1, 4 * H)  # (1, 4*H)
    b2s = b2.reshape(1).astype(f32)

    tm4 = _pick_tile(n4)
    grid = (pl.cdiv(n4, tm4),)

    # VMEM budget: 2 double-buffered x tiles (dense) + 2 double-buffered out
    # tiles (lane-padded to 128) + slack for weights / internal scratch.
    vmem_bytes = int(4 * tm4 * (4 * D) * 4 + (4 << 20))

    out_r = pl.pallas_call(
        mlp_kernel,
        out_shape=jax.ShapeDtypeStruct((n4, 4), jnp.float32),
        grid=grid,
        in_specs=[
            pl.BlockSpec((tm4, 4 * D), lambda i: (i, 0)),       # x: streamed rows
            pl.BlockSpec((4 * D, 4 * H), lambda i: (0, 0)),     # W1T (resident)
            pl.BlockSpec((1, 4 * H), lambda i: (0, 0)),         # b1 tiled
            pl.BlockSpec((4 * H, 4), lambda i: (0, 0)),         # W2T (resident)
            pl.BlockSpec(memory_space=pltpu.MemorySpace.SMEM),  # b2 scalar
        ],
        out_specs=pl.BlockSpec((tm4, 4), lambda i: (i, 0)),
        compiler_params=pltpu.CompilerParams(
            dimension_semantics=("parallel",),
            vmem_limit_bytes=vmem_bytes,
        ),
    )(x_r, w1t, b1t, w2t, b2s)

    # (n4, 4) -> (N, 1): free row-major reshape + tiny tail slice.
    return out_r.reshape(n_pad4, 1)[:N]


def reference_forward(x, w1, b1, w2, b2):
    h = jnp.maximum(x @ w1.T + b1, 0.0)
    return h @ w2.T + b2


if __name__ == "__main__":
    key = jax.random.PRNGKey(0)
    D, Hdim = 32, 3

    kx, kw1, kb1, kw2, kb2, kx2, kx3, kx4 = jax.random.split(key, 8)

    # Deterministic params (uniform +/- 1/sqrt(fan_in), like nn.Linear default).
    lim1 = 1.0 / jnp.sqrt(jnp.float32(D))
    w1 = jax.random.uniform(kw1, (Hdim, D), minval=-lim1, maxval=lim1, dtype=jnp.float32)
    b1 = jax.random.uniform(kb1, (Hdim,), minval=-lim1, maxval=lim1, dtype=jnp.float32)
    lim2 = 1.0 / jnp.sqrt(jnp.float32(Hdim))
    w2 = jax.random.uniform(kw2, (1, Hdim), minval=-lim2, maxval=lim2, dtype=jnp.float32)
    b2 = jax.random.uniform(kb2, (1,), minval=-lim2, maxval=lim2, dtype=jnp.float32)

    def check(xkey, n):
        x = jax.random.normal(xkey, (n, D), dtype=jnp.float32)
        out = jax.block_until_ready(net_forward(x, w1, b1, w2, b2))
        ref = reference_forward(x, w1, b1, w2, b2)
        assert out.shape == (n, 1), out.shape
        assert jnp.allclose(out, ref, atol=1e-4, rtol=1e-4), f"mismatch vs reference (N={n})"

    check(kx, 8)          # small: single full-array block
    check(kx2, 10)        # N % 4 != 0 fallback (tiny tail pad)
    check(kx3, 5000)      # 2-step grid (megacore split) + partial last block
    check(kx4, 100_000)   # TM4_MAX tiles: multi-step pipelined grid + partial tail

    print("KERNEL_OK")
</pallas_src>

<mosaic_0001>
module attributes {stable_mosaic.version = 11 : i64} {
  func.func @mlp_kernel(%arg0: i32, %arg1: memref<2x128xf32, #tpu.memory_space<vmem>>, %arg2: memref<128x12xf32, #tpu.memory_space<vmem>>, %arg3: memref<1x12xf32, #tpu.memory_space<vmem>>, %arg4: memref<12x4xf32, #tpu.memory_space<vmem>>, %arg5: memref<1xf32, #tpu.memory_space<smem>>, %arg6: memref<2x4xf32, #tpu.memory_space<vmem>>) attributes {dimension_semantics = [#tpu.dimension_semantics<parallel>], iteration_bounds = array<i64: 1>, scalar_prefetch = 0 : i64, scratch_operands = 0 : i64, tpu.core_type = #tpu.core_type<tc>, window_params = [{transform_indices = @transform_0, window_bounds = array<i64: 2, 128>}, {pipeline_mode = #tpu.pipeline_mode<synchronous>, transform_indices = @transform_1, window_bounds = array<i64: 128, 12>}, {pipeline_mode = #tpu.pipeline_mode<synchronous>, transform_indices = @transform_2, window_bounds = array<i64: 1, 12>}, {pipeline_mode = #tpu.pipeline_mode<synchronous>, transform_indices = @transform_3, window_bounds = array<i64: 12, 4>}, {transform_indices = @transform_4, window_bounds = array<i64: 1>}, {transform_indices = @transform_5, window_bounds = array<i64: 2, 4>}]} {
    %c0 = arith.constant 0 : index
    %c0_0 = arith.constant 0 : index
    %0 = vector.load %arg1[%c0, %c0_0] : memref<2x128xf32, #tpu.memory_space<vmem>>, vector<2x128xf32>
    %c0_1 = arith.constant 0 : index
    %c0_2 = arith.constant 0 : index
    %1 = vector.load %arg2[%c0_1, %c0_2] : memref<128x12xf32, #tpu.memory_space<vmem>>, vector<128x12xf32>
    %cst = arith.constant dense<0.000000e+00> : vector<2x12xf32>
    %2 = tpu.matmul %0, %1, %cst {dimension_numbers = #tpu.dot_dimension_numbers<[1], [0], [0], [1], [0, 0, 1, 1], [], []>} : vector<2x128xf32>, vector<128x12xf32>, vector<2x12xf32> -> vector<2x12xf32>
    %c0_3 = arith.constant 0 : index
    %c0_4 = arith.constant 0 : index
    %3 = vector.load %arg3[%c0_3, %c0_4] : memref<1x12xf32, #tpu.memory_space<vmem>>, vector<1x12xf32>
    %4 = vector.broadcast %3 : vector<1x12xf32> to vector<2x12xf32>
    %5 = arith.addf %2, %4 : vector<2x12xf32>
    %cst_5 = arith.constant 0.000000e+00 : f32
    %6 = vector.broadcast %cst_5 : f32 to vector<2x12xf32>
    %7 = arith.maximumf %5, %6 : vector<2x12xf32>
    %c0_6 = arith.constant 0 : index
    %c0_7 = arith.constant 0 : index
    %8 = vector.load %arg4[%c0_6, %c0_7] : memref<12x4xf32, #tpu.memory_space<vmem>>, vector<12x4xf32>
    %cst_8 = arith.constant dense<0.000000e+00> : vector<2x4xf32>
    %9 = tpu.matmul %7, %8, %cst_8 {dimension_numbers = #tpu.dot_dimension_numbers<[1], [0], [0], [1], [0, 0, 1, 1], [], []>} : vector<2x12xf32>, vector<12x4xf32>, vector<2x4xf32> -> vector<2x4xf32>
    %c0_9 = arith.constant 0 : index
    %10 = memref.load %arg5[%c0_9] : memref<1xf32, #tpu.memory_space<smem>>
    %11 = vector.broadcast %10 : f32 to vector<2x4xf32>
    %12 = arith.addf %9, %11 : vector<2x4xf32>
    %c0_10 = arith.constant 0 : index
    %c0_11 = arith.constant 0 : index
    %13 = vector.load %arg6[%c0_10, %c0_11] : memref<2x4xf32, #tpu.memory_space<vmem>>, vector<2x4xf32>
    tpu.vector_store %arg6[%c0_10, %c0_11], %12 {strides = array<i32>} : memref<2x4xf32, #tpu.memory_space<vmem>>, vector<2x4xf32>,
    return
  }
  func.func @transform_0(%arg0: i32) -> (i32, i32) {
    %c0_i32 = arith.constant 0 : i32
    %c0_i32_0 = arith.constant 0 : i32
    return %arg0, %c0_i32 : i32, i32
  }
  func.func @transform_1(%arg0: i32) -> (i32, i32) {
    %c0_i32 = arith.constant 0 : i32
    %c0_i32_0 = arith.constant 0 : i32
    %c0_i32_1 = arith.constant 0 : i32
    return %c0_i32, %c0_i32_0 : i32, i32
  }
  func.func @transform_2(%arg0: i32) -> (i32, i32) {
    %c0_i32 = arith.constant 0 : i32
    %c0_i32_0 = arith.constant 0 : i32
    %c0_i32_1 = arith.constant 0 : i32
    return %c0_i32, %c0_i32_0 : i32, i32
  }
  func.func @transform_3(%arg0: i32) -> (i32, i32) {
    %c0_i32 = arith.constant 0 : i32
    %c0_i32_0 = arith.constant 0 : i32
    %c0_i32_1 = arith.constant 0 : i32
    return %c0_i32, %c0_i32_0 : i32, i32
  }
  func.func @transform_4(%arg0: i32) -> i32 {
    %c0_i32 = arith.constant 0 : i32
    %c0_i32_0 = arith.constant 0 : i32
    return %c0_i32 : i32
  }
  func.func @transform_5(%arg0: i32) -> (i32, i32) {
    %c0_i32 = arith.constant 0 : i32
    %c0_i32_0 = arith.constant 0 : i32
    return %arg0, %c0_i32 : i32, i32
  }
}

</mosaic_0001>

<bundles_post_ra>
// kernel: tpu_custom_call.1
= control target key start
LH: loop header
LB: loop body
LE: loop exit
PB: predicated region body
PF: predicated region fallthrough
CT: control target
= control target key end

     0   :  { %s241_s0 = inlined_call_operand.vmem [shape: f32[2,128], index: 0, kind: input, shape index: {}]   ;;  %s242_s1 = inlined_call_operand.vmem [shape: f32[128,12], index: 1, kind: input, shape index: {}]   ;;  %s243_s2 = inlined_call_operand.vmem [shape: f32[1,12], index: 2, kind: input, shape index: {}]   ;;  %s244_s3 = inlined_call_operand.vmem [shape: f32[12,4], index: 3, kind: input, shape index: {}]   ;;  %s245_s4 = inlined_call_operand.<no memory space> [shape: f32[1], index: 4, kind: input, shape index: {}]   ;;  %s246_s5 = inlined_call_operand.hbm [shape: f32[2,4], index: 5, kind: output, shape index: {}]  }
   0x1   :  { %v38_v0 = vld [vmem:[%s242_s1 + $0x78] sm:$0xff]  ;;  %v37_v1 = vld [vmem:[%s242_s1 + $0x70] sm:$0xff]  ;;  %v36_v2 = vld [vmem:[%s242_s1 + $0x68] sm:$0xff] }
   0x2   :  { %43 = vmatpush.msra.mxu0 %v38_v0  ;;  %v35_v3 = vld [vmem:[%s242_s1 + $0x60] sm:$0xff]  ;;  %v34_v4 = vld [vmem:[%s242_s1 + $0x58] sm:$0xff] }
   0x4   :  { %44 = vmatpush.msra.mxu0 %v37_v1 }
   0x6   :  { %45 = vmatpush.msra.mxu0 %v36_v2 }
   0x7   :  { %11 = vsyncpa [#allocation4], 0  ;;  %v33_v5 = vld [vmem:[%s242_s1 + $0x50] sm:$0xff]  ;;  %v32_v6 = vld [vmem:[%s242_s1 + $0x48] sm:$0xff]  ;;  %vm72_vm0 = vcmask 1043456   ;;  %vm68_vm1 = vcmask 97280   ;;  %v67_v23 = vstv %s245_s4 }
   0x8   :  { %46 = vmatpush.msra.mxu0 %v35_v3  ;;  %v31_v7 = vld [vmem:[%s242_s1 + $0x40] sm:$0xff]  ;;  %v30_v8 = vld [vmem:[%s242_s1 + $0x38] sm:$0xff]  ;;  %v29_v9 = vld [vmem:[%s242_s1 + $0x30] sm:$0xff]  ;;  %s144_s8 = smov [#allocation3]   ;;  %vm96_vm2 = vcmask 25600  }
   0x9   :  { %v28_v10 = vld [vmem:[%s242_s1 + $0x28] sm:$0xff]  ;;  %v27_v11 = vld [vmem:[%s242_s1 + $0x20] sm:$0xff]  ;;  %v26_v12 = vld [vmem:[%s242_s1 + $0x18] sm:$0xff]  ;;  %s103_s9 = sshll.u32 %s144_s8, 4  ;;  %s104_s9 = int_to_ptr.vmem [resolvable:$true] %s103_s9 }
   0xa   :  { %47 = vmatpush.msra.mxu0 %v34_v4  ;;  %v25_v13 = vld [vmem:[%s242_s1 + $0x10] sm:$0xff]  ;;  %v24_v14 = vld [vmem:[%s242_s1 + $0x8] sm:$0xff]  ;;  %v23_v15 = vld [vmem:[%s242_s1] sm:$0xff] }
   0xb   :  { %v22_v16 = vld [vmem:[%s241_s0] sm:$0x3]  ;;  %v65_v17 = vld [vmem:[%s244_s3 + $0x8] sm:$0xf] }
   0xc   :  { %48 = vmatpush.msra.mxu0 %v33_v5  ;;  %114 = vmatpush.msk.msra.mxu1 %vm72_vm0, %v65_v17  ;;  %v64_v18 = vld [vmem:[%s244_s3] sm:$0xff]  ;;  %s105_s3 = sshll.u32 %s246_s5, 4  ;;  %s106_s3 = int_to_ptr.hbm [resolvable:$true] %s105_s3 }
   0xd   :  { %v117_v19 = vld [vmem:[%s243_s2] ss:$0 sm:$0xff] }
   0xe   :  { %49 = vmatpush.msra.mxu0 %v32_v6  ;;  %91 = vmatpush.msra.mxu1 %v64_v18 }
  0x10   :  { %50 = vmatpush.msra.mxu0 %v31_v7 }
  0x12   :  { %51 = vmatpush.msra.mxu0 %v30_v8 }
  0x14   :  { %52 = vmatpush.msra.mxu0 %v29_v9 }
  0x16   :  { %53 = vmatpush.msra.mxu0 %v28_v10 }
  0x18   :  { %54 = vmatpush.msra.mxu0 %v27_v11 }
  0x1a   :  { %55 = vmatpush.msra.mxu0 %v26_v12 }
  0x1c   :  { %56 = vmatpush.msra.mxu0 %v25_v13 }
  0x1e   :  { %57 = vmatpush.msra.mxu0 %v24_v14 }
  0x20   :  { %58 = vmatpush.msra.mxu0 %v23_v15 }
  0x21   :  { %59 = vmatmul.f32.vlgmr.msra.gmra.mxu0 %v22_v16 }
  0x9e   :  { %v60_v20 = vpop.f32.mrf.mxu0 }
  0x9f   :  { %v61_v21 = vadd.f32 %v117_v19, %v60_v20 }
  0xa1   :  { %v63_v22 = vmax.f32 %v61_v21, 0.0 }
  0xa3   :  { %115 = vmatmul.msk.f32.vlgmr.msra.gmra.mxu1 %vm68_vm1, %v63_v22 }
 0x120   :  { %v93_v24 = vpop.f32.mrf.mxu1 }
 0x121   :  { %v94_v25 = vadd.f32 %v93_v24, %v67_v23 }
 0x123   :  { %97 = vst.msk [vmem:[#allocation3] sm:$0x3] %vm96_vm2, %v94_v25 }
 0x124   :  { %108 = dma.vmem_to_hbm [thread:$0]  %s104_s9, 32, %s106_s3, [#allocation4]  }
 0x125   :  { %142 = dma.done.wait [#allocation4], 32  }
 0x126   :  { %143 = vsyncadd [#allocation4], 4294967264 }
 0x127   :  { %113 = vsyncpa [#allocation4], 1 }

</bundles_post_ra>
